<compile_context>
chip_gen: v7x
topology: tpu7x:2x2x1
jax: 0.10.0
libtpu: 0.0.40
codegen_flags: <defaults>
</compile_context>

<pallas_src>
import jax
import jax.numpy as jnp
from jax import lax
from jax.experimental import pallas as pl
from jax.experimental.pallas import tpu as pltpu


def _embed_kernel(p_ref, w_ref, prm_ref, o_ref):
    """One (batch, token-tile) grid step.

    p_ref  : (1, TILE_TOK, K) bf16   patch tile (tokens x flattened receptive field)
    w_ref  : (D, K)           bf16   conv weight, resident across the grid
    prm_ref: (D, 3)           f32    columns = [conv_bias, ln_gamma, ln_beta]
    o_ref  : (1, D, TILE_TOK) f32    NCHW-ordered output tile
    """
    p = p_ref[0]                                     # (TILE_TOK, K)
    w = w_ref[...]                                   # (D, K)
    # Contract K on both operands -> (D, TILE_TOK); f32 accumulation on the MXU.
    y = lax.dot_general(w, p, (((1,), (1,)), ((), ())),
                        preferred_element_type=jnp.float32)

    prm = prm_ref[...]                               # (D, 3)
    bias = prm[:, 0:1]
    gamma = prm[:, 1:2]
    beta = prm[:, 2:3]

    y = y + bias                                     # broadcast over tokens (lanes)

    # LayerNorm over embed_dim (sublane axis), eps=1e-5 (PyTorch default).
    # Two-pass centered variance: robust when |mean| >> std.
    mean = jnp.mean(y, axis=0, keepdims=True)        # (1, TILE_TOK)
    diff = y - mean
    var = jnp.mean(diff * diff, axis=0, keepdims=True)
    inv = lax.rsqrt(var + 1e-5)

    o_ref[0] = ((diff * inv) * gamma + beta).astype(o_ref.dtype)


def _choose_token_tile(n_tok, K, D):
    """Largest token tile (multiple of 128) whose double-buffered footprint fits a
    conservative VMEM budget, safe across v5e / v6e / v7x scoped-VMEM defaults."""
    budget = 14 * 1024 * 1024
    weight_bytes = 2 * (D * K * 2)                   # bf16 weight, x2 buffering
    per_tok = 2 * (K * 2) + 2 * (D * 4)              # patch dbuf (bf16) + out dbuf (f32)
    avail = max(budget - weight_bytes - (1 << 16), per_tok * 128)
    tile = min(4096, avail // per_tok)
    tile = max(128, (tile // 128) * 128)
    if n_tok <= tile:
        return n_tok                                 # full dim: always a legal block
    return tile


def overlap_patch_embed(x, conv_w, conv_b, ln_g, ln_b, *, patch_size=7, stride=4):
    """x: (B, C_in, H, W). conv_w: (D, C_in, k, k). Returns (B, D, Ho, Wo) in x.dtype."""
    B, C, H, W = x.shape
    D = conv_w.shape[0]
    k = patch_size
    pad = patch_size // 2
    Ho = (H + 2 * pad - k) // stride + 1
    Wo = (W + 2 * pad - k) // stride + 1
    n_tok = Ho * Wo
    K = C * k * k

    # ---- glue: im2col directly in bf16 (single HBM write of the intermediate) ----
    # Output (B, Ho, Wo, C*k*k); feature dim ordered as flattened (C, kh, kw),
    # matching conv_w.reshape(D, C*k*k).
    patches = lax.conv_general_dilated_patches(
        x.astype(jnp.bfloat16),
        filter_shape=(k, k),
        window_strides=(stride, stride),
        padding=((pad, pad), (pad, pad)),
        dimension_numbers=("NCHW", "OIHW", "NHWC"),
    ).reshape(B, n_tok, K)

    w2d = conv_w.reshape(D, K).astype(jnp.bfloat16)                          # (D, K)
    params = jnp.stack([conv_b, ln_g, ln_b], axis=-1).astype(jnp.float32)    # (D, 3)

    TILE_TOK = _choose_token_tile(n_tok, K, D)
    grid = (B, pl.cdiv(n_tok, TILE_TOK))

    out_bpe = jnp.dtype(x.dtype).itemsize
    cost = pl.CostEstimate(
        flops=2 * B * n_tok * K * D,
        transcendentals=B * n_tok,
        bytes_accessed=B * n_tok * K * 2 + D * K * 2 + B * n_tok * D * out_bpe + D * 3 * 4,
    )

    out = pl.pallas_call(
        _embed_kernel,
        out_shape=jax.ShapeDtypeStruct((B, D, n_tok), x.dtype),
        grid=grid,
        in_specs=[
            # Token tiles stream (pipelined); last tile may be partial — the store
            # is masked and nothing reduces across the token axis in the kernel.
            pl.BlockSpec((1, TILE_TOK, K), lambda b, t: (b, t, 0)),
            pl.BlockSpec((D, K), lambda b, t: (0, 0)),      # weight: resident
            pl.BlockSpec((D, 3), lambda b, t: (0, 0)),      # [bias, gamma, beta]
        ],
        out_specs=pl.BlockSpec((1, D, TILE_TOK), lambda b, t: (b, 0, t)),
        compiler_params=pltpu.CompilerParams(
            dimension_semantics=("parallel", "parallel"),
            vmem_limit_bytes=32 * 1024 * 1024,
        ),
        cost_estimate=cost,
    )(patches, w2d, params)

    # (B, D, Ho*Wo) -> (B, D, Ho, Wo): metadata-only reshape, no extra HBM pass.
    return out.reshape(B, D, Ho, Wo)


def _reference(x, conv_w, conv_b, ln_g, ln_b, *, patch_size=7, stride=4):
    pad = patch_size // 2
    y = lax.conv_general_dilated(
        x, conv_w, window_strides=(stride, stride),
        padding=((pad, pad), (pad, pad)),
        dimension_numbers=("NCHW", "OIHW", "NCHW"),
    ) + conv_b[None, :, None, None]
    B, C, H, W = y.shape
    t = jnp.transpose(y, (0, 2, 3, 1)).reshape(B, H * W, C)
    mean = jnp.mean(t, axis=-1, keepdims=True)
    var = jnp.mean((t - mean) ** 2, axis=-1, keepdims=True)
    t = (t - mean) / jnp.sqrt(var + 1e-5) * ln_g + ln_b
    return jnp.transpose(t.reshape(B, H, W, C), (0, 3, 1, 2))


if __name__ == "__main__":
    key = jax.random.PRNGKey(0)
    k0, k1, k2 = jax.random.split(key, 3)

    B, C_in, H, W = 2, 4, 16, 16
    embed_dim, patch_size, stride = 32, 7, 4

    x = jax.random.normal(k0, (B, C_in, H, W), dtype=jnp.float32)
    conv_w = 0.05 * jax.random.normal(k1, (embed_dim, C_in, patch_size, patch_size), jnp.float32)
    conv_b = 0.01 * jax.random.normal(k2, (embed_dim,), jnp.float32)
    ln_g = jnp.ones((embed_dim,), jnp.float32)
    ln_b = jnp.zeros((embed_dim,), jnp.float32)

    out = overlap_patch_embed(x, conv_w, conv_b, ln_g, ln_b,
                              patch_size=patch_size, stride=stride)
    out = jax.block_until_ready(out)

    ref = _reference(x, conv_w, conv_b, ln_g, ln_b,
                     patch_size=patch_size, stride=stride)
    assert out.shape == (B, embed_dim, H // stride, W // stride), out.shape
    # bf16 matmul inputs -> slightly loosened tolerance vs the f32 reference.
    err = float(jnp.max(jnp.abs(out - ref)))
    assert jnp.allclose(out, ref, atol=3e-2, rtol=3e-2), err

    print("KERNEL_OK")
</pallas_src>

<mosaic_0001>
module attributes {stable_mosaic.version = 11 : i64} {
  func.func @_embed_kernel(%arg0: i32, %arg1: i32, %arg2: memref<1x16x196xbf16, #tpu.memory_space<vmem>>, %arg3: memref<32x196xbf16, #tpu.memory_space<vmem>>, %arg4: memref<32x3xf32, #tpu.memory_space<vmem>>, %arg5: memref<1x32x16xf32, #tpu.memory_space<vmem>>) attributes {dimension_semantics = [#tpu.dimension_semantics<parallel>, #tpu.dimension_semantics<parallel>], iteration_bounds = array<i64: 2, 1>, scalar_prefetch = 0 : i64, scratch_operands = 0 : i64, tpu.core_type = #tpu.core_type<tc>, window_params = [{transform_indices = @transform_0, window_bounds = array<i64: 1, 16, 196>}, {pipeline_mode = #tpu.pipeline_mode<synchronous>, transform_indices = @transform_1, window_bounds = array<i64: 32, 196>}, {pipeline_mode = #tpu.pipeline_mode<synchronous>, transform_indices = @transform_2, window_bounds = array<i64: 32, 3>}, {transform_indices = @transform_3, window_bounds = array<i64: 1, 32, 16>}]} {
    %c0 = arith.constant 0 : index
    %c0_0 = arith.constant 0 : index
    %c0_1 = arith.constant 0 : index
    %0 = vector.load %arg2[%c0, %c0_0, %c0_1] : memref<1x16x196xbf16, #tpu.memory_space<vmem>>, vector<1x16x196xbf16>
    %1 = vector.shape_cast %0 : vector<1x16x196xbf16> to vector<16x196xbf16>
    %c0_2 = arith.constant 0 : index
    %c0_3 = arith.constant 0 : index
    %2 = vector.load %arg3[%c0_2, %c0_3] : memref<32x196xbf16, #tpu.memory_space<vmem>>, vector<32x196xbf16>
    %cst = arith.constant dense<0.000000e+00> : vector<32x16xf32>
    %3 = tpu.matmul %2, %1, %cst {dimension_numbers = #tpu.dot_dimension_numbers<[1], [1], [0], [0], [0, 0, 1, 0], [], []>} : vector<32x196xbf16>, vector<16x196xbf16>, vector<32x16xf32> -> vector<32x16xf32>
    %c0_4 = arith.constant 0 : index
    %c0_5 = arith.constant 0 : index
    %4 = vector.load %arg4[%c0_4, %c0_5] : memref<32x3xf32, #tpu.memory_space<vmem>>, vector<32x3xf32>
    %5 = vector.extract_strided_slice %4 {offsets = [0, 0], sizes = [32, 1], strides = [1, 1]} : vector<32x3xf32> to vector<32x1xf32>
    %6 = vector.extract_strided_slice %4 {offsets = [0, 1], sizes = [32, 1], strides = [1, 1]} : vector<32x3xf32> to vector<32x1xf32>
    %7 = vector.extract_strided_slice %4 {offsets = [0, 2], sizes = [32, 1], strides = [1, 1]} : vector<32x3xf32> to vector<32x1xf32>
    %8 = vector.broadcast %5 : vector<32x1xf32> to vector<32x16xf32>
    %9 = arith.addf %3, %8 : vector<32x16xf32>
    %cst_6 = arith.constant dense<0.000000e+00> : vector<16xf32>
    %10 = vector.multi_reduction <add>, %9, %cst_6 [0] : vector<32x16xf32> to vector<16xf32>
    %11 = vector.shape_cast %10 : vector<16xf32> to vector<1x16xf32>
    %cst_7 = arith.constant 3.200000e+01 : f32
    %12 = vector.broadcast %cst_7 : f32 to vector<1x16xf32>
    %13 = arith.divf %11, %12 : vector<1x16xf32>
    %14 = vector.broadcast %13 : vector<1x16xf32> to vector<32x16xf32>
    %15 = arith.subf %9, %14 : vector<32x16xf32>
    %16 = arith.mulf %15, %15 : vector<32x16xf32>
    %cst_8 = arith.constant dense<0.000000e+00> : vector<16xf32>
    %17 = vector.multi_reduction <add>, %16, %cst_8 [0] : vector<32x16xf32> to vector<16xf32>
    %18 = vector.shape_cast %17 : vector<16xf32> to vector<1x16xf32>
    %cst_9 = arith.constant 3.200000e+01 : f32
    %19 = vector.broadcast %cst_9 : f32 to vector<1x16xf32>
    %20 = arith.divf %18, %19 : vector<1x16xf32>
    %cst_10 = arith.constant 9.99999974E-6 : f32
    %21 = vector.broadcast %cst_10 : f32 to vector<1x16xf32>
    %22 = arith.addf %20, %21 : vector<1x16xf32>
    %23 = math.rsqrt %22 : vector<1x16xf32>
    %24 = vector.broadcast %23 : vector<1x16xf32> to vector<32x16xf32>
    %25 = arith.mulf %15, %24 : vector<32x16xf32>
    %26 = vector.broadcast %6 : vector<32x1xf32> to vector<32x16xf32>
    %27 = arith.mulf %25, %26 : vector<32x16xf32>
    %28 = vector.broadcast %7 : vector<32x1xf32> to vector<32x16xf32>
    %29 = arith.addf %27, %28 : vector<32x16xf32>
    %c0_11 = arith.constant 0 : index
    %c0_12 = arith.constant 0 : index
    %c0_13 = arith.constant 0 : index
    %30 = vector.load %arg5[%c0_11, %c0_12, %c0_13] : memref<1x32x16xf32, #tpu.memory_space<vmem>>, vector<1x32x16xf32>
    %31 = vector.shape_cast %30 : vector<1x32x16xf32> to vector<32x16xf32>
    %32 = vector.shape_cast %29 : vector<32x16xf32> to vector<1x32x16xf32>
    tpu.vector_store %arg5[%c0_11, %c0_12, %c0_13], %32 {strides = array<i32>} : memref<1x32x16xf32, #tpu.memory_space<vmem>>, vector<1x32x16xf32>,
    return
  }
  func.func @transform_0(%arg0: i32, %arg1: i32) -> (i32, i32, i32) {
    %c0_i32 = arith.constant 0 : i32
    %c0_i32_0 = arith.constant 0 : i32
    return %arg0, %arg1, %c0_i32 : i32, i32, i32
  }
  func.func @transform_1(%arg0: i32, %arg1: i32) -> (i32, i32) {
    %c0_i32 = arith.constant 0 : i32
    %c0_i32_0 = arith.constant 0 : i32
    %c0_i32_1 = arith.constant 0 : i32
    return %c0_i32, %c0_i32_0 : i32, i32
  }
  func.func @transform_2(%arg0: i32, %arg1: i32) -> (i32, i32) {
    %c0_i32 = arith.constant 0 : i32
    %c0_i32_0 = arith.constant 0 : i32
    %c0_i32_1 = arith.constant 0 : i32
    return %c0_i32, %c0_i32_0 : i32, i32
  }
  func.func @transform_3(%arg0: i32, %arg1: i32) -> (i32, i32, i32) {
    %c0_i32 = arith.constant 0 : i32
    %c0_i32_0 = arith.constant 0 : i32
    return %arg0, %c0_i32, %arg1 : i32, i32, i32
  }
}

</mosaic_0001>

<bundles_post_ra>
// kernel: tpu_custom_call.1
= control target key start
LH: loop header
LB: loop body
LE: loop exit
PB: predicated region body
PF: predicated region fallthrough
CT: control target
= control target key end

     0   :  { %8 = vsyncpa [#allocation3], 0  ;;  %s694_s12 = smov 0   ;;  %s696_s13 = smov 0   ;;  %s798_s0 = inlined_call_operand.vmem [shape: bf16[2,16,196], index: 0, kind: input, shape index: {}]   ;;  %s799_s1 = inlined_call_operand.hbm [shape: bf16[32,196], index: 1, kind: input, shape index: {}]   ;;  %s800_s2 = inlined_call_operand.vmem [shape: f32[32,3], index: 2, kind: input, shape index: {}]   ;;  %s801_s3 = inlined_call_operand.vmem [shape: f32[2,32,16], index: 3, kind: output, shape index: {}]  }
   0x1   :  { %s698_s14 = smov 0  }
   0x2 LB: > { %s529_s15 = sadd.s32 4294967295, %s666_s14   ;;  %s26_s16 = sadd.s32 1, %s662_s13  ;;  %s666_s14 = sphi %s698_s14, %s14_s14   ;;  %s662_s13 = sphi %s696_s13, %s811_s13   ;;  %s658_s12 = sphi %s694_s12, %s810_s12  }
   0x3   : > { %p28_p0 = scmp.ge.s32.totalorder %s26_s16, 2  ;;  %p531_p1 = scmp.ge.s32.totalorder %s666_s14, 1 }
   0x4   : > { %p129_p2 = scmp.lt.s32.totalorder %s666_s14, 3  ;;  %p719_p4 = scmp.eq.s32.totalorder %s529_s15, 0 }
   0x5   : > { %s813_s16 = smov (%p28_p0, %s26_s16), 0  ;;  %s668_s19 = smov [#allocation2]  }
   0x6   : > { %p715_p3 = pnand %p531_p1, %p129_p2  ;;  %s141_s20 = sshll.u32 %s668_s19, 4  ;;  %s142_s20 = int_to_ptr.vmem [resolvable:$true] %s141_s20 }
   0x7   : > { %s806_s18 = scalar_select %p719_p4, 1, 0 }
   0x8   : > { %s805_s17 = scalar_select %p715_p3, 1, 0 }
   0x9   : > { %p559_p5 = pneg %p715_p3  ;;  %s612_s24 = scalar_lea.hbm %s799_s1, 512 }
   0xa   : > { %p613_p7 = scmp.ne.s32.totalorder %s799_s1, %s612_s24  ;;  %p619_p11 = scmp.lt.u32.totalorder %s612_s24, %s799_s1 }
   0xb   : > { %p727_p6 = pnand %p719_p4, %p559_p5 }
   0xd   : > { %p614_p8 = pneg %p727_p6 }
   0xf   : > { %p615_p9 = pnand %p614_p8, %p613_p7 }
  0x11   : > { %p616_p10 = pneg %p615_p9 }
  0x13   : > { %p621_p12 = pnand %p619_p11, %p616_p10 }
  0x15   : > { %624 = shalt.err (!%p621_p12)
}
  0x16   : > { %s625_s29 = scalar_lea.vmem %s142_s20, 512  ;;  %p633_p2 = scmp.lt.s32.totalorder %s142_s20, %s142_s20 }
  0x17   : > { %p626_p13 = scmp.ne.s32.totalorder %s142_s20, %s625_s29  ;;  %p634_p5 = scmp.lt.s32.totalorder %s625_s29, %s625_s29 }
  0x19   : > { %p628_p0 = pnand %p626_p13, %p614_p8  ;;  %p635_p4 = por %p634_p5, %p633_p2 }
  0x1b   : > { %p629_p1 = pneg %p628_p0 }
  0x1d   : > { %p636_p3 = pnand %p635_p4, %p629_p1 }
  0x1f   : > { %639 = shalt.err (!%p636_p3)
}
  0x20   : > { %s669_s30 = smov 128   ;;  %s670_s4 = smov 8  }
  0x21   : > { %562 = dma.hbm_to_vmem [thread:$0]  (!%p727_p6), %s799_s1, 512, %s142_s20, [#allocation3], %s669_s30, %s669_s30, %s670_s4  }
  0x22   : > { %p808_p7 = scmp.ne.s32.totalorder %s805_s17, 0 }
  0x23   : > { %p809_p9 = scmp.ne.s32.totalorder (!%p808_p7), %s806_s18, 0 }
  0x24   : > { %174 = sbr.rel (%p808_p7) target bundleno = 341 (0x155), region = 32 }
  0x2b   : > { %653 = dma.done.wait (%p809_p9), [#allocation3], 512  }
  0x2c   : > { %655 = vsyncadd (%p809_p9), [#allocation3], 4294966784  ;;  %p207_p3 = scmp.lt.s32.totalorder %s658_s12, 1  ;;  %v671_v0 = vmov 0   ;;  %vm283_vm0 = vcmask 556032   ;;  %v232_v5 = vld [vmem:[%s800_s2] sm:$0xff] }
  0x2d   : > { %595 = vset.pattern.permute.xlu0 %v671_v0  ;;  %596 = vset.pattern.permute.xlu1 %v671_v0  ;;  %v606_v3 = vld [vmem:[#allocation2 + $0x4] ss:$8 sps:$4 sm:$0xff]   ;;  %v609_v4 = vld [vmem:[#allocation2 + $0x14] ss:$8 sps:$4 sm:$0xff]   ;;  %v604_v7 = vld [vmem:[#allocation2] ss:$8 sps:$4 sm:$0xff]  }
  0x2e   : > { %s815_s12 = smov (!%p207_p3, %s658_s12), 1  ;;  %547 = vmatprep.mubr.msk.bf16.mxu0 %vm283_vm0, %v606_v3  ;;  %v234_v6 = vld [vmem:[%s800_s2 + $0x10] sm:$0xff]  ;;  %548 = vmatprep.mubr.msk.bf16.mxu1 %vm283_vm0, %v609_v4  ;;  %v233_v9 = vld [vmem:[%s800_s2 + $0x8] sm:$0xff]  ;;  %v235_v10 = vld [vmem:[%s800_s2 + $0x18] sm:$0xff]  ;;  %v672_v11 = vmov 1   ;;  %v673_v12 = vmov 2  }
  0x2f   : > { %s551_s7 = sshll.u32 %s815_s12, 4  ;;  %238 = vperm.xlu0 %595, %v232_v5   ;;  %v607_v8 = vld [vmem:[#allocation2 + $0x10] ss:$8 sps:$4 sm:$0xff]   ;;  %248 = vperm.xlu1 %596, %v234_v6   ;;  %vm342_vm1 = vcmask 130048   ;;  %s552_s23 = sshll.u32 %s815_s12, 5 }
  0x30   : > { %s215_s10 = scalar_lea.vmem %s798_s0, %s551_s7  ;;  %s224_s26 = scalar_lea.vmem %s801_s3, %s552_s23 }
  0x31   : > { %v601_v1 = vld [vmem:[%s215_s10 + $0x4] ss:$8 sps:$4 sm:$0xff]   ;;  %v603_v2 = vld [vmem:[%s215_s10] ss:$8 sps:$4 sm:$0xff]  }
  0x32   : > { %546 = vmatprep.subr.msk.bf16.mxu0 %vm283_vm0, %v601_v1  ;;  %553 = vmatprep.subr.msk.bf16.mxu1 %vm283_vm0, %v601_v1 }
  0x33   : > { %294 = vmatpush1.bf16.xpose.msra.mxu0 %v603_v2  ;;  %554 = vmatpush1.bf16.xpose.msra.mxu1 %v603_v2 }
  0x34   : > { %243 = vperm.xlu0 %595, %v233_v9   ;;  %253 = vperm.xlu1 %596, %v235_v10  }
  0x38   : > { %597 = vset.pattern.permute.xlu0 %v672_v11  ;;  %598 = vset.pattern.permute.xlu1 %v672_v11 }
  0x39   : > { %387 = vperm.xlu0 %597, %v232_v5   ;;  %391 = vperm.xlu1 %598, %v233_v9  }
  0x3a   : > { %326 = vmatmul.mubr.bf16.vlgmr.msra.gmra.mrb[0].mxu0 %v604_v7  ;;  %334 = vmatmul.mubr.bf16.vlgmr.msra.gmra.mrb[0].mxu1 %v607_v8 }
  0x3d   : > { %399 = vperm.xlu0 %597, %v235_v10   ;;  %395 = vperm.xlu1 %598, %v234_v6  }
  0x41   : > { %600 = vset.pattern.permute.xlu0 %v673_v12  ;;  %599 = vset.pattern.permute.xlu1 %v673_v12 }
  0x42   : > { %411 = vperm.xlu0 %600, %v233_v9   ;;  %407 = vperm.xlu1 %599, %v232_v5  }
  0x46   : > { %415 = vperm.xlu1 %599, %v234_v6  }
  0x4a   : > { %419 = vperm.xlu1 %599, %v235_v10  }
  0xae   : > { %v239_v13 = vpop.permute.xlu0 %238  ;;  %v249_v14 = vpop.permute.xlu1 %248 }
  0xb3   : > { %v244_v15 = vpop.permute.xlu0 %243  ;;  %v254_v16 = vpop.permute.xlu1 %253 }
  0xb8   : > { %v392_v61 = vpop.permute.xlu1 %391  ;;  %v388_v5 = vpop.permute.xlu0 %387 }
  0xbc   : > { %v396_v2 = vpop.permute.xlu1 %395  ;;  %v400_v7 = vpop.permute.xlu0 %399 }
  0xc1   : > { %v408_v4 = vpop.permute.xlu1 %407 }
  0xc5   : > { %v416_v6 = vpop.permute.xlu1 %415 }
 0x10d   : > { %v327_v17 = vpop.f32.mrb[0].mxu0  ;;  %v335_v18 = vpop.f32.mrb[0].mxu1 }
 0x10e   : > { %v328_v19 = vadd.f32 %v327_v17, %v239_v13  ;;  %v329_v20 = vpop.f32.mrb[1].mxu0  ;;  %v337_v21 = vpop.f32.mrb[1].mxu1  ;;  %v336_v24 = vadd.f32 %v335_v18, %v249_v14 }
 0x10f   : > { %v330_v22 = vpop.f32.mrb[2].mxu0  ;;  %v338_v23 = vpop.f32.mrb[2].mxu1 }
 0x110   : > { %v331_v25 = vadd.f32 %v330_v22, %v244_v15  ;;  %v332_v26 = vpop.f32.mrb[3].mxu0  ;;  %v340_v27 = vpop.f32.mrb[3].mxu1  ;;  %v343_v28 = vsel %vm342_vm1, %v328_v19, 0.0  ;;  %v339_v30 = vadd.f32 %v338_v23, %v254_v16  ;;  %v346_v32 = vsel %vm342_vm1, %v336_v24, 0.0 }
 0x111   : > { %v412_v13 = vpop.permute.xlu0 %411  ;;  %v420_v18 = vpop.permute.xlu1 %419 }
 0x112   : > { %v344_v29 = vsel %vm342_vm1, %v331_v25, 0.0  ;;  %v348_v34 = vsel %vm342_vm1, %v339_v30, 0.0 }
 0x113   : > { %v345_v31 = vadd.f32 %v344_v29, %v343_v28 }
 0x115   : > { %v347_v33 = vadd.f32 %v346_v32, %v345_v31 }
 0x117   : > { %v349_v35 = vadd.f32 %v348_v34, %v347_v33 }
 0x119   : > { %v350_v36 = vrot.slane %v349_v35, 4 }
 0x11b   : > { %v351_v37 = vadd.f32 %v350_v36, %v349_v35 }
 0x11d   : > { %v352_v38 = vrot.slane %v351_v37, 2 }
 0x11f   : > { %v353_v39 = vadd.f32 %v352_v38, %v351_v37 }
 0x121   : > { %v354_v40 = vrot.slane %v353_v39, 1 }
 0x123   : > { %v355_v41 = vadd.f32 %v354_v40, %v353_v39 }
 0x125   : > { %v357_v42 = vmul.f32 0.03125, %v355_v41 }
 0x127   : > { %v360_v43 = vsub.f32 %v336_v24, %v357_v42  ;;  %v361_v44 = vsub.f32 %v339_v30, %v357_v42  ;;  %v358_v45 = vsub.f32 %v328_v19, %v357_v42  ;;  %v359_v46 = vsub.f32 %v331_v25, %v357_v42 }
 0x129   : > { %v362_v47 = vmul.f32 %v358_v45, %v358_v45  ;;  %v363_v48 = vmul.f32 %v359_v46, %v359_v46  ;;  %v364_v49 = vmul.f32 %v360_v43, %v360_v43  ;;  %v365_v50 = vmul.f32 %v361_v44, %v361_v44 }
 0x12b   : > { %v366_v51 = vsel %vm342_vm1, %v362_v47, 0.0  ;;  %v367_v52 = vsel %vm342_vm1, %v363_v48, 0.0  ;;  %v369_v54 = vsel %vm342_vm1, %v364_v49, 0.0  ;;  %v371_v56 = vsel %vm342_vm1, %v365_v50, 0.0 }
 0x12c   : > { %v368_v53 = vadd.f32 %v367_v52, %v366_v51 }
 0x12e   : > { %v370_v55 = vadd.f32 %v369_v54, %v368_v53 }
 0x130   : > { %v372_v57 = vadd.f32 %v371_v56, %v370_v55 }
 0x132   : > { %v373_v58 = vrot.slane %v372_v57, 4 }
 0x134   : > { %v374_v59 = vadd.f32 %v373_v58, %v372_v57 }
 0x136   : > { %v375_v60 = vrot.slane %v374_v59, 2 }
 0x138   : > { %v376_v62 = vadd.f32 %v375_v60, %v374_v59 }
 0x13a   : > { %v377_v63 = vrot.slane %v376_v62, 1 }
 0x13c   : > { %v378_v0 = vadd.f32 %v377_v63, %v376_v62 }
 0x13e   : > { %v379_v1 = vmul.f32 0.03125, %v378_v0 }
 0x140   : > { %v380_v3 = vadd.f32 1e-05, %v379_v1 }
 0x142   : > { %610 = vrsqrt.f32 %v380_v3 }
 0x14c   : > { %v611_v8 = vpop.eup %610 }
 0x14d   : > { %v383_v9 = vmul.f32 %v611_v8, %v359_v46  ;;  %v384_v10 = vmul.f32 %v611_v8, %v360_v43  ;;  %v382_v11 = vmul.f32 %v611_v8, %v358_v45  ;;  %v385_v12 = vmul.f32 %v611_v8, %v361_v44 }
 0x14f   : > { %v403_v14 = vmul.f32 %v392_v61, %v383_v9  ;;  %v404_v15 = vmul.f32 %v396_v2, %v384_v10  ;;  %v402_v16 = vmul.f32 %v388_v5, %v382_v11  ;;  %v405_v17 = vmul.f32 %v400_v7, %v385_v12 }
 0x151   : > { %v422_v19 = vadd.f32 %v408_v4, %v402_v16  ;;  %v424_v20 = vadd.f32 %v416_v6, %v404_v15  ;;  %v425_v21 = vadd.f32 %v420_v18, %v405_v17  ;;  %v423_v22 = vadd.f32 %v412_v13, %v403_v14 }
 0x153   : > { %426 = vst.msk [vmem:[%s224_s26] sm:$0xff] %vm342_vm1, %v422_v19  ;;  %428 = vst.msk [vmem:[%s224_s26 + $0x10] sm:$0xff] %vm342_vm1, %v424_v20 }
 0x154   : > { %429 = vst.msk [vmem:[%s224_s26 + $0x18] sm:$0xff] %vm342_vm1, %v425_v21  ;;  %427 = vst.msk [vmem:[%s224_s26 + $0x8] sm:$0xff] %vm342_vm1, %v423_v22 }
 0x155 PF: > { %s14_s14 = sadd.s32 1, %s666_s14   ;;  %s810_s12 = smov %s662_s13 }
 0x156   : > { %p11_p4 = scmp.ge.s32.totalorder %s14_s14, 4   ;;  %s811_s13 = smov %s813_s16 }
 0x158   :  { %13 = sbr.rel (!%p11_p4) target bundleno = 2 (0x2), region = 67 }
 0x15f   :  { %457 = vsyncpa [#allocation3], 1 }
 0x160   :  { %459 = vsyncpa [#allocation3 + $0x1], 1 }

</bundles_post_ra>
